<compile_context>
chip_gen: v7x
topology: tpu7x:2x2x1
jax: 0.10.0
libtpu: 0.0.40
codegen_flags: <defaults>
</compile_context>

<pallas_src>
import functools

import jax
import jax.numpy as jnp
from jax.experimental import pallas as pl
from jax.experimental.pallas import tpu as pltpu


def _round_up(n, m):
    return -(-n // m) * m


def _pad2d(x, rows, cols):
    r, c = x.shape
    return jnp.pad(x, ((0, rows - r), (0, cols - c)))


def actor_kernel(obs_ref,                          # (TB, RP)    matmul dtype
                 w1_ref, b1_ref,                   # trunk linear
                 g_ref, beta_ref,                  # layernorm affine (f32)
                 w2_ref, b2_ref,                   # policy linear 1
                 w3_ref, b3_ref,                   # policy linear 2
                 w4_ref, b4_ref,                   # policy linear 3
                 mu_ref,                           # (TB, AP)    f32 output
                 *, true_feature_dim):
    mm_dtype = w1_ref.dtype                        # f32 or bf16 matmul operands

    x = obs_ref[...]

    # ---- trunk: Linear -> LayerNorm -> Tanh --------------------------------
    h = jnp.dot(x, w1_ref[...], preferred_element_type=jnp.float32)
    h = h + b1_ref[...]                            # f32 bias broadcast
    # Padded feature lanes of h are exactly zero (zero-padded W1 cols / b1), so
    # a single fused pass (sum, sum-of-squares) over the padded width yields
    # the statistics of the true features; divide by the TRUE feature count.
    inv_n = 1.0 / float(true_feature_dim)
    mean = jnp.sum(h, axis=-1, keepdims=True) * inv_n
    mean_sq = jnp.sum(h * h, axis=-1, keepdims=True) * inv_n
    var = mean_sq - mean * mean
    h = (h - mean) * jax.lax.rsqrt(var + 1e-5)     # LayerNorm eps = 1e-5
    h = h * g_ref[...] + beta_ref[...]             # padded lanes -> 0 (g=b=0)
    h = jnp.tanh(h)                                # EUP

    # ---- policy: Linear -> ReLU -> Linear -> ReLU -> Linear -> Tanh --------
    z = jnp.dot(h.astype(mm_dtype), w2_ref[...],
                preferred_element_type=jnp.float32) + b2_ref[...]
    z = jnp.maximum(z, 0.0)
    z = jnp.dot(z.astype(mm_dtype), w3_ref[...],
                preferred_element_type=jnp.float32) + b3_ref[...]
    z = jnp.maximum(z, 0.0)
    mu = jnp.dot(z.astype(mm_dtype), w4_ref[...],
                 preferred_element_type=jnp.float32) + b4_ref[...]
    mu = jnp.tanh(mu)

    mu_ref[...] = mu.astype(mu_ref.dtype)          # lane-dense (AP % 128 == 0)


def actor_forward(obs, params, std_scalar, *, matmul_dtype=jnp.float32):
    """Returns (mu, std) — the parameters of utils.TruncatedNormal(mu, std)."""
    B, repr_dim = obs.shape
    feature_dim = params["w1"].shape[1]
    hidden_dim = params["w2"].shape[1]
    action_dim = params["w4"].shape[1]

    # ---- lane-dense padding: every matmul/lane dim -> multiple of 128 ------
    RP = _round_up(repr_dim, 128)
    FP = _round_up(feature_dim, 128)
    HP = _round_up(hidden_dim, 128)
    AP = _round_up(action_dim, 128)

    mm_itemsize = jnp.dtype(matmul_dtype).itemsize

    # ---- batch tiling (grid over rows; weights stay resident) --------------
    TB = 256
    if B <= TB:
        TB = _round_up(max(B, 1), 8)
    # keep a double-buffered obs tile <= ~16 MiB so tiles also fit v7x (64 MiB)
    while TB > 8 and 2 * TB * RP * mm_itemsize > (16 << 20):
        TB //= 2
    B_pad = _round_up(B, TB)
    grid = (B_pad // TB,)

    obs_p = _pad2d(obs, B_pad, RP).astype(matmul_dtype)

    # weights in matmul dtype (bf16 halves HBM traffic on v6e/v7x);
    # biases / LayerNorm affine stay f32 (elementwise path, esp. v5e).
    w1 = _pad2d(params["w1"], RP, FP).astype(matmul_dtype)
    w2 = _pad2d(params["w2"], FP, HP).astype(matmul_dtype)
    w3 = _pad2d(params["w3"], HP, HP).astype(matmul_dtype)
    w4 = _pad2d(params["w4"], HP, AP).astype(matmul_dtype)
    b1 = _pad2d(params["b1"], 1, FP).astype(jnp.float32)
    b2 = _pad2d(params["b2"], 1, HP).astype(jnp.float32)
    b3 = _pad2d(params["b3"], 1, HP).astype(jnp.float32)
    b4 = _pad2d(params["b4"], 1, AP).astype(jnp.float32)
    ln_g = _pad2d(params["ln_g"], 1, FP).astype(jnp.float32)
    ln_b = _pad2d(params["ln_b"], 1, FP).astype(jnp.float32)

    # ---- explicit VMEM budget: 2x (tiles + resident weights) + headroom ----
    weight_bytes = (RP * FP + FP * HP + HP * HP + HP * AP) * mm_itemsize
    small_bytes = (3 * FP + 2 * HP + AP) * 4
    tile_bytes = TB * RP * mm_itemsize + TB * AP * 4
    vmem_limit = 2 * (weight_bytes + small_bytes + tile_bytes) + (8 << 20)
    vmem_limit = int(min(max(vmem_limit, 32 << 20), 64 << 20))

    # ---- advisory cost for the XLA scheduler --------------------------------
    flops = 2 * B_pad * (RP * FP + FP * HP + HP * HP + HP * AP)
    transcendentals = B_pad * (FP + AP + FP)       # 2x tanh + rsqrt per row
    bytes_accessed = (B_pad * RP * mm_itemsize + B_pad * AP * 4
                      + weight_bytes + small_bytes)
    cost = pl.CostEstimate(flops=int(flops),
                           transcendentals=int(transcendentals),
                           bytes_accessed=int(bytes_accessed))

    const = lambda i: (0, 0)
    kernel = functools.partial(actor_kernel, true_feature_dim=feature_dim)

    mu_p = pl.pallas_call(
        kernel,
        out_shape=jax.ShapeDtypeStruct((B_pad, AP), jnp.float32),
        grid=grid,
        in_specs=[
            pl.BlockSpec((TB, RP), lambda i: (i, 0)),     # obs tile (pipelined)
            pl.BlockSpec((RP, FP), const),                # w1   (VMEM-resident)
            pl.BlockSpec((1, FP), const),                 # b1
            pl.BlockSpec((1, FP), const),                 # ln gamma
            pl.BlockSpec((1, FP), const),                 # ln beta
            pl.BlockSpec((FP, HP), const),                # w2
            pl.BlockSpec((1, HP), const),                 # b2
            pl.BlockSpec((HP, HP), const),                # w3
            pl.BlockSpec((1, HP), const),                 # b3
            pl.BlockSpec((HP, AP), const),                # w4
            pl.BlockSpec((1, AP), const),                 # b4
        ],
        out_specs=pl.BlockSpec((TB, AP), lambda i: (i, 0)),
        compiler_params=pltpu.CompilerParams(
            dimension_semantics=("parallel",),            # v7x: 2 TCs share grid
            vmem_limit_bytes=vmem_limit,
        ),
        cost_estimate=cost,
    )(obs_p, w1, b1, ln_g, ln_b, w2, b2, w3, b3, w4, b4)

    mu = mu_p[:B, :action_dim]
    # std is a constant broadcast: no reason to write it from the kernel.
    std = jnp.full_like(mu, std_scalar)
    return mu, std


def init_params(key, repr_dim, feature_dim, hidden_dim, action_dim):
    """Deterministic synthetic init (shapes match the PyTorch module)."""
    ks = jax.random.split(key, 4)

    def lin(k, fan_in, fan_out):
        w = jax.random.normal(k, (fan_in, fan_out), jnp.float32) / jnp.sqrt(fan_in)
        b = jnp.zeros((1, fan_out), jnp.float32)
        return w, b

    w1, b1 = lin(ks[0], repr_dim, feature_dim)
    w2, b2 = lin(ks[1], feature_dim, hidden_dim)
    w3, b3 = lin(ks[2], hidden_dim, hidden_dim)
    w4, b4 = lin(ks[3], hidden_dim, action_dim)
    return {
        "w1": w1, "b1": b1,
        "ln_g": jnp.ones((1, feature_dim), jnp.float32),
        "ln_b": jnp.zeros((1, feature_dim), jnp.float32),
        "w2": w2, "b2": b2,
        "w3": w3, "b3": b3,
        "w4": w4, "b4": b4,
    }


def actor_ref(obs, p, std_scalar):
    """Pure-JAX reference of the PyTorch forward, for a correctness check."""
    h = obs @ p["w1"] + p["b1"]
    mean = jnp.mean(h, axis=-1, keepdims=True)
    var = jnp.mean(jnp.square(h - mean), axis=-1, keepdims=True)
    h = (h - mean) * jax.lax.rsqrt(var + 1e-5)
    h = jnp.tanh(h * p["ln_g"] + p["ln_b"])
    z = jnp.maximum(h @ p["w2"] + p["b2"], 0.0)
    z = jnp.maximum(z @ p["w3"] + p["b3"], 0.0)
    mu = jnp.tanh(z @ p["w4"] + p["b4"])
    return mu, jnp.ones_like(mu) * std_scalar


if __name__ == "__main__":
    # Small shapes consistent with the module (padded internally to 128 lanes).
    B, repr_dim, feature_dim, hidden_dim, action_dim = 8, 64, 32, 32, 4
    std_scalar = 0.1

    key = jax.random.PRNGKey(0)
    k_obs, k_par = jax.random.split(key)
    obs = jax.random.normal(k_obs, (B, repr_dim), jnp.float32)
    params = init_params(k_par, repr_dim, feature_dim, hidden_dim, action_dim)

    mu_ref, std_ref = actor_ref(obs, params, std_scalar)

    # f32 matmul path (exactness check).
    mu, std = actor_forward(obs, params, std_scalar, matmul_dtype=jnp.float32)
    jax.block_until_ready((mu, std))
    assert mu.shape == (B, action_dim) and std.shape == (B, action_dim)
    assert jnp.allclose(mu, mu_ref, atol=1e-4, rtol=1e-4)
    assert jnp.allclose(std, std_ref, atol=1e-6, rtol=1e-6)

    # bf16 matmul-operand path (bandwidth/MXU path for v6e/v7x), looser tol.
    mu_bf, std_bf = actor_forward(obs, params, std_scalar,
                                  matmul_dtype=jnp.bfloat16)
    jax.block_until_ready((mu_bf, std_bf))
    assert jnp.allclose(mu_bf, mu_ref, atol=5e-2, rtol=5e-2)

    print("KERNEL_OK")
</pallas_src>

<mosaic_0001>
module attributes {stable_mosaic.version = 11 : i64} {
  func.func @actor_kernel(%arg0: i32, %arg1: memref<8x128xf32, #tpu.memory_space<vmem>>, %arg2: memref<128x128xf32, #tpu.memory_space<vmem>>, %arg3: memref<1x128xf32, #tpu.memory_space<vmem>>, %arg4: memref<1x128xf32, #tpu.memory_space<vmem>>, %arg5: memref<1x128xf32, #tpu.memory_space<vmem>>, %arg6: memref<128x128xf32, #tpu.memory_space<vmem>>, %arg7: memref<1x128xf32, #tpu.memory_space<vmem>>, %arg8: memref<128x128xf32, #tpu.memory_space<vmem>>, %arg9: memref<1x128xf32, #tpu.memory_space<vmem>>, %arg10: memref<128x128xf32, #tpu.memory_space<vmem>>, %arg11: memref<1x128xf32, #tpu.memory_space<vmem>>, %arg12: memref<8x128xf32, #tpu.memory_space<vmem>>) attributes {dimension_semantics = [#tpu.dimension_semantics<parallel>], iteration_bounds = array<i64: 1>, scalar_prefetch = 0 : i64, scratch_operands = 0 : i64, tpu.core_type = #tpu.core_type<tc>, window_params = [{transform_indices = @transform_0, window_bounds = array<i64: 8, 128>}, {pipeline_mode = #tpu.pipeline_mode<synchronous>, transform_indices = @transform_1, window_bounds = array<i64: 128, 128>}, {pipeline_mode = #tpu.pipeline_mode<synchronous>, transform_indices = @transform_2, window_bounds = array<i64: 1, 128>}, {pipeline_mode = #tpu.pipeline_mode<synchronous>, transform_indices = @transform_3, window_bounds = array<i64: 1, 128>}, {pipeline_mode = #tpu.pipeline_mode<synchronous>, transform_indices = @transform_4, window_bounds = array<i64: 1, 128>}, {pipeline_mode = #tpu.pipeline_mode<synchronous>, transform_indices = @transform_5, window_bounds = array<i64: 128, 128>}, {pipeline_mode = #tpu.pipeline_mode<synchronous>, transform_indices = @transform_6, window_bounds = array<i64: 1, 128>}, {pipeline_mode = #tpu.pipeline_mode<synchronous>, transform_indices = @transform_7, window_bounds = array<i64: 128, 128>}, {pipeline_mode = #tpu.pipeline_mode<synchronous>, transform_indices = @transform_8, window_bounds = array<i64: 1, 128>}, {pipeline_mode = #tpu.pipeline_mode<synchronous>, transform_indices = @transform_9, window_bounds = array<i64: 128, 128>}, {pipeline_mode = #tpu.pipeline_mode<synchronous>, transform_indices = @transform_10, window_bounds = array<i64: 1, 128>}, {transform_indices = @transform_11, window_bounds = array<i64: 8, 128>}]} {
    %c0 = arith.constant 0 : index
    %c0_0 = arith.constant 0 : index
    %0 = vector.load %arg1[%c0, %c0_0] : memref<8x128xf32, #tpu.memory_space<vmem>>, vector<8x128xf32>
    %c0_1 = arith.constant 0 : index
    %c0_2 = arith.constant 0 : index
    %1 = vector.load %arg2[%c0_1, %c0_2] : memref<128x128xf32, #tpu.memory_space<vmem>>, vector<128x128xf32>
    %cst = arith.constant dense<0.000000e+00> : vector<8x128xf32>
    %2 = tpu.matmul %0, %1, %cst {dimension_numbers = #tpu.dot_dimension_numbers<[1], [0], [0], [1], [0, 0, 1, 1], [], []>} : vector<8x128xf32>, vector<128x128xf32>, vector<8x128xf32> -> vector<8x128xf32>
    %c0_3 = arith.constant 0 : index
    %c0_4 = arith.constant 0 : index
    %3 = vector.load %arg3[%c0_3, %c0_4] : memref<1x128xf32, #tpu.memory_space<vmem>>, vector<1x128xf32>
    %4 = vector.broadcast %3 : vector<1x128xf32> to vector<8x128xf32>
    %5 = arith.addf %2, %4 : vector<8x128xf32>
    %cst_5 = arith.constant dense<0.000000e+00> : vector<8xf32>
    %6 = vector.multi_reduction <add>, %5, %cst_5 [1] : vector<8x128xf32> to vector<8xf32>
    %7 = vector.shape_cast %6 : vector<8xf32> to vector<8x1xf32>
    %cst_6 = arith.constant 3.125000e-02 : f32
    %8 = vector.broadcast %cst_6 : f32 to vector<8x1xf32>
    %9 = arith.mulf %7, %8 : vector<8x1xf32>
    %10 = arith.mulf %5, %5 : vector<8x128xf32>
    %cst_7 = arith.constant dense<0.000000e+00> : vector<8xf32>
    %11 = vector.multi_reduction <add>, %10, %cst_7 [1] : vector<8x128xf32> to vector<8xf32>
    %12 = vector.shape_cast %11 : vector<8xf32> to vector<8x1xf32>
    %cst_8 = arith.constant 3.125000e-02 : f32
    %13 = vector.broadcast %cst_8 : f32 to vector<8x1xf32>
    %14 = arith.mulf %12, %13 : vector<8x1xf32>
    %15 = arith.mulf %9, %9 : vector<8x1xf32>
    %16 = arith.subf %14, %15 : vector<8x1xf32>
    %17 = vector.broadcast %9 : vector<8x1xf32> to vector<8x128xf32>
    %18 = arith.subf %5, %17 : vector<8x128xf32>
    %cst_9 = arith.constant 9.99999974E-6 : f32
    %19 = vector.broadcast %cst_9 : f32 to vector<8x1xf32>
    %20 = arith.addf %16, %19 : vector<8x1xf32>
    %21 = math.rsqrt %20 : vector<8x1xf32>
    %22 = vector.broadcast %21 : vector<8x1xf32> to vector<8x128xf32>
    %23 = arith.mulf %18, %22 : vector<8x128xf32>
    %c0_10 = arith.constant 0 : index
    %c0_11 = arith.constant 0 : index
    %24 = vector.load %arg4[%c0_10, %c0_11] : memref<1x128xf32, #tpu.memory_space<vmem>>, vector<1x128xf32>
    %25 = vector.broadcast %24 : vector<1x128xf32> to vector<8x128xf32>
    %26 = arith.mulf %23, %25 : vector<8x128xf32>
    %c0_12 = arith.constant 0 : index
    %c0_13 = arith.constant 0 : index
    %27 = vector.load %arg5[%c0_12, %c0_13] : memref<1x128xf32, #tpu.memory_space<vmem>>, vector<1x128xf32>
    %28 = vector.broadcast %27 : vector<1x128xf32> to vector<8x128xf32>
    %29 = arith.addf %26, %28 : vector<8x128xf32>
    %30 = math.tanh %29 : vector<8x128xf32>
    %c0_14 = arith.constant 0 : index
    %c0_15 = arith.constant 0 : index
    %31 = vector.load %arg6[%c0_14, %c0_15] : memref<128x128xf32, #tpu.memory_space<vmem>>, vector<128x128xf32>
    %cst_16 = arith.constant dense<0.000000e+00> : vector<8x128xf32>
    %32 = tpu.matmul %30, %31, %cst_16 {dimension_numbers = #tpu.dot_dimension_numbers<[1], [0], [0], [1], [0, 0, 1, 1], [], []>} : vector<8x128xf32>, vector<128x128xf32>, vector<8x128xf32> -> vector<8x128xf32>
    %c0_17 = arith.constant 0 : index
    %c0_18 = arith.constant 0 : index
    %33 = vector.load %arg7[%c0_17, %c0_18] : memref<1x128xf32, #tpu.memory_space<vmem>>, vector<1x128xf32>
    %34 = vector.broadcast %33 : vector<1x128xf32> to vector<8x128xf32>
    %35 = arith.addf %32, %34 : vector<8x128xf32>
    %cst_19 = arith.constant 0.000000e+00 : f32
    %36 = vector.broadcast %cst_19 : f32 to vector<8x128xf32>
    %37 = arith.maximumf %35, %36 : vector<8x128xf32>
    %c0_20 = arith.constant 0 : index
    %c0_21 = arith.constant 0 : index
    %38 = vector.load %arg8[%c0_20, %c0_21] : memref<128x128xf32, #tpu.memory_space<vmem>>, vector<128x128xf32>
    %cst_22 = arith.constant dense<0.000000e+00> : vector<8x128xf32>
    %39 = tpu.matmul %37, %38, %cst_22 {dimension_numbers = #tpu.dot_dimension_numbers<[1], [0], [0], [1], [0, 0, 1, 1], [], []>} : vector<8x128xf32>, vector<128x128xf32>, vector<8x128xf32> -> vector<8x128xf32>
    %c0_23 = arith.constant 0 : index
    %c0_24 = arith.constant 0 : index
    %40 = vector.load %arg9[%c0_23, %c0_24] : memref<1x128xf32, #tpu.memory_space<vmem>>, vector<1x128xf32>
    %41 = vector.broadcast %40 : vector<1x128xf32> to vector<8x128xf32>
    %42 = arith.addf %39, %41 : vector<8x128xf32>
    %cst_25 = arith.constant 0.000000e+00 : f32
    %43 = vector.broadcast %cst_25 : f32 to vector<8x128xf32>
    %44 = arith.maximumf %42, %43 : vector<8x128xf32>
    %c0_26 = arith.constant 0 : index
    %c0_27 = arith.constant 0 : index
    %45 = vector.load %arg10[%c0_26, %c0_27] : memref<128x128xf32, #tpu.memory_space<vmem>>, vector<128x128xf32>
    %cst_28 = arith.constant dense<0.000000e+00> : vector<8x128xf32>
    %46 = tpu.matmul %44, %45, %cst_28 {dimension_numbers = #tpu.dot_dimension_numbers<[1], [0], [0], [1], [0, 0, 1, 1], [], []>} : vector<8x128xf32>, vector<128x128xf32>, vector<8x128xf32> -> vector<8x128xf32>
    %c0_29 = arith.constant 0 : index
    %c0_30 = arith.constant 0 : index
    %47 = vector.load %arg11[%c0_29, %c0_30] : memref<1x128xf32, #tpu.memory_space<vmem>>, vector<1x128xf32>
    %48 = vector.broadcast %47 : vector<1x128xf32> to vector<8x128xf32>
    %49 = arith.addf %46, %48 : vector<8x128xf32>
    %50 = math.tanh %49 : vector<8x128xf32>
    %c0_31 = arith.constant 0 : index
    %c0_32 = arith.constant 0 : index
    %51 = vector.load %arg12[%c0_31, %c0_32] : memref<8x128xf32, #tpu.memory_space<vmem>>, vector<8x128xf32>
    tpu.vector_store %arg12[%c0_31, %c0_32], %50 {strides = array<i32>} : memref<8x128xf32, #tpu.memory_space<vmem>>, vector<8x128xf32>,
    return
  }
  func.func @transform_0(%arg0: i32) -> (i32, i32) {
    %c0_i32 = arith.constant 0 : i32
    %c0_i32_0 = arith.constant 0 : i32
    return %arg0, %c0_i32 : i32, i32
  }
  func.func @transform_1(%arg0: i32) -> (i32, i32) {
    %c0_i32 = arith.constant 0 : i32
    %c0_i32_0 = arith.constant 0 : i32
    %c0_i32_1 = arith.constant 0 : i32
    return %c0_i32, %c0_i32_0 : i32, i32
  }
  func.func @transform_2(%arg0: i32) -> (i32, i32) {
    %c0_i32 = arith.constant 0 : i32
    %c0_i32_0 = arith.constant 0 : i32
    %c0_i32_1 = arith.constant 0 : i32
    return %c0_i32, %c0_i32_0 : i32, i32
  }
  func.func @transform_3(%arg0: i32) -> (i32, i32) {
    %c0_i32 = arith.constant 0 : i32
    %c0_i32_0 = arith.constant 0 : i32
    %c0_i32_1 = arith.constant 0 : i32
    return %c0_i32, %c0_i32_0 : i32, i32
  }
  func.func @transform_4(%arg0: i32) -> (i32, i32) {
    %c0_i32 = arith.constant 0 : i32
    %c0_i32_0 = arith.constant 0 : i32
    %c0_i32_1 = arith.constant 0 : i32
    return %c0_i32, %c0_i32_0 : i32, i32
  }
  func.func @transform_5(%arg0: i32) -> (i32, i32) {
    %c0_i32 = arith.constant 0 : i32
    %c0_i32_0 = arith.constant 0 : i32
    %c0_i32_1 = arith.constant 0 : i32
    return %c0_i32, %c0_i32_0 : i32, i32
  }
  func.func @transform_6(%arg0: i32) -> (i32, i32) {
    %c0_i32 = arith.constant 0 : i32
    %c0_i32_0 = arith.constant 0 : i32
    %c0_i32_1 = arith.constant 0 : i32
    return %c0_i32, %c0_i32_0 : i32, i32
  }
  func.func @transform_7(%arg0: i32) -> (i32, i32) {
    %c0_i32 = arith.constant 0 : i32
    %c0_i32_0 = arith.constant 0 : i32
    %c0_i32_1 = arith.constant 0 : i32
    return %c0_i32, %c0_i32_0 : i32, i32
  }
  func.func @transform_8(%arg0: i32) -> (i32, i32) {
    %c0_i32 = arith.constant 0 : i32
    %c0_i32_0 = arith.constant 0 : i32
    %c0_i32_1 = arith.constant 0 : i32
    return %c0_i32, %c0_i32_0 : i32, i32
  }
  func.func @transform_9(%arg0: i32) -> (i32, i32) {
    %c0_i32 = arith.constant 0 : i32
    %c0_i32_0 = arith.constant 0 : i32
    %c0_i32_1 = arith.constant 0 : i32
    return %c0_i32, %c0_i32_0 : i32, i32
  }
  func.func @transform_10(%arg0: i32) -> (i32, i32) {
    %c0_i32 = arith.constant 0 : i32
    %c0_i32_0 = arith.constant 0 : i32
    %c0_i32_1 = arith.constant 0 : i32
    return %c0_i32, %c0_i32_0 : i32, i32
  }
  func.func @transform_11(%arg0: i32) -> (i32, i32) {
    %c0_i32 = arith.constant 0 : i32
    %c0_i32_0 = arith.constant 0 : i32
    return %arg0, %c0_i32 : i32, i32
  }
}

</mosaic_0001>

<bundles_post_ra>
// kernel: tpu_custom_call.1
= control target key start
LH: loop header
LB: loop body
LE: loop exit
PB: predicated region body
PF: predicated region fallthrough
CT: control target
= control target key end

     0   :  { %16 = vsyncpa [#allocation3], 0  ;;  %s1215_s0 = inlined_call_operand.hbm [shape: f32[8,128], index: 0, kind: input, shape index: {}]   ;;  %s1216_s1 = inlined_call_operand.hbm [shape: f32[128,128], index: 1, kind: input, shape index: {}]   ;;  %s1217_s2 = inlined_call_operand.vmem [shape: f32[1,128], index: 2, kind: input, shape index: {}]   ;;  %s1218_s3 = inlined_call_operand.vmem [shape: f32[1,128], index: 3, kind: input, shape index: {}]   ;;  %s1219_s4 = inlined_call_operand.vmem [shape: f32[1,128], index: 4, kind: input, shape index: {}]   ;;  %s1220_s5 = inlined_call_operand.hbm [shape: f32[128,128], index: 5, kind: input, shape index: {}]   ;;  %s1221_s6 = inlined_call_operand.vmem [shape: f32[1,128], index: 6, kind: input, shape index: {}]   ;;  %s1222_s7 = inlined_call_operand.hbm [shape: f32[128,128], index: 7, kind: input, shape index: {}]   ;;  %s1223_s8 = inlined_call_operand.vmem [shape: f32[1,128], index: 8, kind: input, shape index: {}]   ;;  %s1224_s9 = inlined_call_operand.hbm [shape: f32[128,128], index: 9, kind: input, shape index: {}]   ;;  %s1225_s10 = inlined_call_operand.vmem [shape: f32[1,128], index: 10, kind: input, shape index: {}]   ;;  %s1226_s11 = inlined_call_operand.hbm [shape: f32[8,128], index: 11, kind: output, shape index: {}]  }
   0x1   :  { %17 = vsyncpa [#allocation6], 0 }
   0x2   :  { %18 = vsyncpa [#allocation9], 0 }
   0x3   :  { %19 = vsyncpa [#allocation4], 0  ;;  %s996_s17 = smov [#allocation5]   ;;  %s856_s21 = scalar_lea.hbm %s1216_s1, 2048 }
   0x4   :  { %s35_s18 = sshll.u32 %s996_s17, 4  ;;  %p857_p0 = scmp.ne.s32.totalorder %s1216_s1, %s856_s21  ;;  %s36_s18 = int_to_ptr.vmem [resolvable:$true] %s35_s18 }
   0x5   :  { %p860_p1 = scmp.lt.u32.totalorder %s856_s21, %s1216_s1 }
   0x7   :  { %p862_p2 = pnand %p860_p1, %p857_p0 }
   0x9   :  { %865 = shalt.err (!%p862_p2)
}
   0xa   :  { %s866_s26 = scalar_lea.vmem %s36_s18, 2048  ;;  %p871_p4 = scmp.lt.s32.totalorder %s36_s18, %s36_s18 }
   0xb   :  { %p867_p3 = scmp.ne.s32.totalorder %s36_s18, %s866_s26  ;;  %p872_p5 = scmp.lt.s32.totalorder %s866_s26, %s866_s26 }
   0xd   :  { %p873_p6 = por %p872_p5, %p871_p4 }
   0xf   :  { %p874_p7 = pnand %p873_p6, %p867_p3 }
  0x11   :  { %877 = shalt.err (!%p874_p7)
}
  0x12   :  { %s997_s27 = smov 128   ;;  %s998_s28 = smov 8  }
  0x13   :  { %41 = dma.hbm_to_vmem [thread:$0]  %s1216_s1, 2048, %s36_s18, [#allocation6], %s997_s27, %s997_s27, %s998_s28  }
  0x14   :  { %s999_s12 = smov [#allocation8]   ;;  %s1000_s14 = smov [#allocation2]  }
  0x15   :  { %s67_s13 = sshll.u32 %s999_s12, 4  ;;  %s26_s15 = sshll.u32 %s1000_s14, 4  ;;  %s68_s13 = int_to_ptr.vmem [resolvable:$true] %s67_s13  ;;  %s27_s15 = int_to_ptr.vmem [resolvable:$true] %s26_s15 }
  0x16   :  { %s878_s19 = scalar_lea.hbm %s1222_s7, 2048 }
  0x17   :  { %p879_p8 = scmp.ne.s32.totalorder %s1222_s7, %s878_s19  ;;  %p882_p9 = scmp.lt.u32.totalorder %s878_s19, %s1222_s7 }
  0x19   :  { %p884_p10 = pnand %p882_p9, %p879_p8 }
  0x1b   :  { %887 = shalt.err (!%p884_p10)
}
  0x1c   :  { %s888_s1 = scalar_lea.vmem %s68_s13, 2048  ;;  %p893_p12 = scmp.lt.s32.totalorder %s68_s13, %s68_s13 }
  0x1d   :  { %p889_p11 = scmp.ne.s32.totalorder %s68_s13, %s888_s1  ;;  %p894_p13 = scmp.lt.s32.totalorder %s888_s1, %s888_s1 }
  0x1f   :  { %p895_p0 = por %p894_p13, %p893_p12 }
  0x21   :  { %p896_p1 = pnand %p895_p0, %p889_p11 }
  0x23   :  { %899 = shalt.err (!%p896_p1)
}
  0x24   :  { %73 = dma.hbm_to_vmem [thread:$0]  %s1222_s7, 2048, %s68_s13, [#allocation9], %s997_s27, %s997_s27, %s998_s28  }
  0x25   :  { %s900_s29 = scalar_lea.hbm %s1215_s0, 128 }
  0x26   :  { %p901_p2 = scmp.ne.s32.totalorder %s1215_s0, %s900_s29  ;;  %p904_p3 = scmp.lt.u32.totalorder %s900_s29, %s1215_s0 }
  0x28   :  { %p906_p4 = pnand %p904_p3, %p901_p2 }
  0x2a   :  { %909 = shalt.err (!%p906_p4)
}
  0x2b   :  { %s910_s17 = scalar_lea.vmem %s27_s15, 128  ;;  %p915_p6 = scmp.lt.s32.totalorder %s27_s15, %s27_s15 }
  0x2c   :  { %p911_p5 = scmp.ne.s32.totalorder %s27_s15, %s910_s17  ;;  %p916_p7 = scmp.lt.s32.totalorder %s910_s17, %s910_s17 }
  0x2e   :  { %p917_p8 = por %p916_p7, %p915_p6 }
  0x30   :  { %p918_p9 = pnand %p917_p8, %p911_p5 }
  0x32   :  { %921 = shalt.err (!%p918_p9)
}
  0x33   :  { %29 = dma.hbm_to_vmem [thread:$0]  %s1215_s0, 128, %s27_s15, [#allocation3]  }
  0x34   :  { %s1001_s19 = smov [#allocation7]   ;;  %s1002_s21 = smov [#allocation10]  }
  0x35   :  { %s53_s20 = sshll.u32 %s1001_s19, 4  ;;  %s81_s22 = sshll.u32 %s1002_s21, 4  ;;  %s54_s20 = int_to_ptr.vmem [resolvable:$true] %s53_s20  ;;  %s82_s22 = int_to_ptr.vmem [resolvable:$true] %s81_s22 }
  0x36   :  { %s922_s18 = scalar_lea.hbm %s1220_s5, 2048 }
  0x37   :  { %p923_p10 = scmp.ne.s32.totalorder %s1220_s5, %s922_s18  ;;  %p926_p11 = scmp.lt.u32.totalorder %s922_s18, %s1220_s5 }
  0x39   :  { %p928_p12 = pnand %p926_p11, %p923_p10 }
  0x3b   :  { %931 = shalt.err (!%p928_p12)
}
  0x3c   :  { %s932_s0 = scalar_lea.vmem %s54_s20, 2048  ;;  %p937_p0 = scmp.lt.s32.totalorder %s54_s20, %s54_s20 }
  0x3d   :  { %p933_p13 = scmp.ne.s32.totalorder %s54_s20, %s932_s0  ;;  %p938_p1 = scmp.lt.s32.totalorder %s932_s0, %s932_s0 }
  0x3f   :  { %p939_p2 = por %p938_p1, %p937_p0 }
  0x41   :  { %p940_p3 = pnand %p939_p2, %p933_p13 }
  0x43   :  { %943 = shalt.err (!%p940_p3)
}
  0x44   :  { %59 = dma.hbm_to_vmem [thread:$0]  %s1220_s5, 2048, %s54_s20, [#allocation6], %s997_s27, %s997_s27, %s998_s28  }
  0x45   :  { %s944_s16 = scalar_lea.hbm %s1224_s9, 2048 }
  0x46   :  { %p945_p4 = scmp.ne.s32.totalorder %s1224_s9, %s944_s16  ;;  %p948_p5 = scmp.lt.u32.totalorder %s944_s16, %s1224_s9 }
  0x48   :  { %p950_p6 = pnand %p948_p5, %p945_p4 }
  0x4a   :  { %953 = shalt.err (!%p950_p6)
}
  0x4b   :  { %s954_s21 = scalar_lea.vmem %s82_s22, 2048  ;;  %p959_p8 = scmp.lt.s32.totalorder %s82_s22, %s82_s22 }
  0x4c   :  { %p955_p7 = scmp.ne.s32.totalorder %s82_s22, %s954_s21  ;;  %p960_p9 = scmp.lt.s32.totalorder %s954_s21, %s954_s21 }
  0x4e   :  { %p961_p10 = por %p960_p9, %p959_p8 }
  0x50   :  { %p962_p11 = pnand %p961_p10, %p955_p7 }
  0x52   :  { %965 = shalt.err (!%p962_p11)
}
  0x53   :  { %87 = dma.hbm_to_vmem [thread:$0]  %s1224_s9, 2048, %s82_s22, [#allocation9], %s997_s27, %s997_s27, %s998_s28  }
  0x54   :  { %988 = dma.done.wait [#allocation3], 128  }
  0x55   :  { %989 = vsyncadd [#allocation3], 4294967168 }
  0x56   :  { %990 = dma.done.wait [#allocation6], 4096  }
  0x57   :  { %991 = vsyncadd [#allocation6], 4294963200 }
  0x58   :  { %992 = dma.done.wait [#allocation9], 4096  }
  0x59   :  { %993 = vsyncadd [#allocation9], 4294963200  ;;  %v1003_v0 = vmov 0.0|0.0   ;;  %vm1004_vm0 = vmmov 0   ;;  %v1005_v1 = vmov 0.0   ;;  %v106_v2 = vld [vmem:[#allocation5] sm:$0xff] }
  0x5a   :  { %743 = vmatprep.subr.bf16.mxu0 %v1003_v0  ;;  %635 = vmatprep.mubr.msk.f32.mxu0 %vm1004_vm0, %v1005_v1  ;;  %v107_v3 = vld [vmem:[#allocation5 + $0x8] sm:$0xff]  ;;  %v108_v4 = vld [vmem:[#allocation5 + $0x10] sm:$0xff]  ;;  %v109_v6 = vld [vmem:[#allocation5 + $0x18] sm:$0xff]  ;;  %s1006_s25 = smov [#allocation11]  }
  0x5b   :  { %767 = vmatprep.subr.bf16.mxu1 %v1003_v0  ;;  %670 = vmatprep.mubr.msk.f32.mxu1 %vm1004_vm0, %v1005_v1  ;;  %v744_v5 = vpack.c.bf16 %v107_v3, %v106_v2  ;;  %v747_v7 = vpack.c.bf16 %v109_v6, %v108_v4  ;;  %v110_v8 = vld [vmem:[#allocation5 + $0x20] sm:$0xff]  ;;  %v111_v9 = vld [vmem:[#allocation5 + $0x28] sm:$0xff]  ;;  %v112_v11 = vld [vmem:[#allocation5 + $0x30] sm:$0xff]  ;;  %s518_s26 = sshll.u32 %s1006_s25, 4  ;;  %s519_s26 = int_to_ptr.vmem [resolvable:$true] %s518_s26 }
  0x5c   :  { %v750_v10 = vpack.c.bf16 %v111_v9, %v110_v8  ;;  %v113_v12 = vld [vmem:[#allocation5 + $0x38] sm:$0xff]  ;;  %v114_v14 = vld [vmem:[#allocation5 + $0x40] sm:$0xff]  ;;  %v115_v15 = vld [vmem:[#allocation5 + $0x48] sm:$0xff]  ;;  %s966_s29 = scalar_lea.vmem %s519_s26, 128  ;;  %p971_p13 = scmp.lt.s32.totalorder %s519_s26, %s519_s26 }
  0x5d   :  { %745 = vmatpush3.bf16.msra.mxu0 %v744_v5  ;;  %v753_v13 = vpack.c.bf16 %v113_v12, %v112_v11  ;;  %v756_v16 = vpack.c.bf16 %v115_v15, %v114_v14  ;;  %v116_v17 = vld [vmem:[#allocation5 + $0x50] sm:$0xff]  ;;  %v117_v18 = vld [vmem:[#allocation5 + $0x58] sm:$0xff]  ;;  %v118_v20 = vld [vmem:[#allocation5 + $0x60] sm:$0xff]  ;;  %p967_p12 = scmp.ne.s32.totalorder %s519_s26, %s966_s29  ;;  %p972_p0 = scmp.lt.s32.totalorder %s966_s29, %s966_s29 }
  0x5e   :  { %746 = vmatprep.subr.bf16.mxu0 %v1003_v0  ;;  %v759_v19 = vpack.c.bf16 %v117_v18, %v116_v17  ;;  %v119_v21 = vld [vmem:[#allocation5 + $0x68] sm:$0xff]  ;;  %v120_v23 = vld [vmem:[#allocation5 + $0x70] sm:$0xff]  ;;  %v121_v24 = vld [vmem:[#allocation5 + $0x78] sm:$0xff] }
  0x5f   :  { %v762_v22 = vpack.c.bf16 %v119_v21, %v118_v20  ;;  %v765_v25 = vpack.c.bf16 %v121_v24, %v120_v23  ;;  %v105_v26 = vld [vmem:[#allocation2] sm:$0xff]  ;;  %v229_v32 = vld [vmem:[#allocation7] sm:$0xff]  ;;  %v230_v33 = vld [vmem:[#allocation7 + $0x8] sm:$0xff]  ;;  %p973_p1 = por %p972_p0, %p971_p13 }
  0x60   :  { %v529_v27 = vld [vmem:[%s1217_s2] ss:$0 sm:$0xff]  ;;  %v768_v34 = vpack.c.bf16 %v230_v33, %v229_v32  ;;  %v231_v35 = vld [vmem:[#allocation7 + $0x10] sm:$0xff]  ;;  %v233_v38 = vld [vmem:[#allocation7 + $0x20] sm:$0xff] }
  0x61   :  { %748 = vmatpush3.bf16.msra.mxu0 %v747_v7  ;;  %v232_v36 = vld [vmem:[#allocation7 + $0x18] sm:$0xff]  ;;  %v234_v39 = vld [vmem:[#allocation7 + $0x28] sm:$0xff]  ;;  %v235_v41 = vld [vmem:[#allocation7 + $0x30] sm:$0xff]  ;;  %p974_p2 = pnand %p973_p1, %p967_p12 }
  0x62   :  { %749 = vmatprep.subr.bf16.mxu0 %v1003_v0  ;;  %769 = vmatpush3.bf16.msra.mxu1 %v768_v34  ;;  %v771_v37 = vpack.c.bf16 %v232_v36, %v231_v35  ;;  %v774_v40 = vpack.c.bf16 %v234_v39, %v233_v38  ;;  %v236_v42 = vld [vmem:[#allocation7 + $0x38] sm:$0xff]  ;;  %v237_v44 = vld [vmem:[#allocation7 + $0x40] sm:$0xff]  ;;  %v238_v45 = vld [vmem:[#allocation7 + $0x48] sm:$0xff] }
  0x63   :  { %770 = vmatprep.subr.bf16.mxu1 %v1003_v0  ;;  %v777_v43 = vpack.c.bf16 %v236_v42, %v235_v41  ;;  %v780_v46 = vpack.c.bf16 %v238_v45, %v237_v44  ;;  %v239_v47 = vld [vmem:[#allocation7 + $0x50] sm:$0xff]  ;;  %v240_v48 = vld [vmem:[#allocation7 + $0x58] sm:$0xff]  ;;  %v241_v50 = vld [vmem:[#allocation7 + $0x60] sm:$0xff] }
  0x64   :  { %v783_v49 = vpack.c.bf16 %v240_v48, %v239_v47  ;;  %v242_v51 = vld [vmem:[#allocation7 + $0x68] sm:$0xff]  ;;  %v243_v53 = vld [vmem:[#allocation7 + $0x70] sm:$0xff]  ;;  %v244_v54 = vld [vmem:[#allocation7 + $0x78] sm:$0xff] }
  0x65   :  { %751 = vmatpush3.bf16.msra.mxu0 %v750_v10  ;;  %v786_v52 = vpack.c.bf16 %v242_v51, %v241_v50  ;;  %v789_v55 = vpack.c.bf16 %v244_v54, %v243_v53  ;;  %v323_v56 = vld [vmem:[#allocation8] sm:$0xff]  ;;  %v324_v57 = vld [vmem:[#allocation8 + $0x8] sm:$0xff]  ;;  %v325_v58 = vld [vmem:[#allocation8 + $0x10] sm:$0xff] }
  0x66   :  { %752 = vmatprep.subr.bf16.mxu0 %v1003_v0  ;;  %772 = vmatpush3.bf16.msra.mxu1 %v771_v37  ;;  %v792_v59 = vpack.c.bf16 %v324_v57, %v323_v56  ;;  %v326_v60 = vld [vmem:[#allocation8 + $0x18] sm:$0xff]  ;;  %v327_v62 = vld [vmem:[#allocation8 + $0x20] sm:$0xff]  ;;  %v328_v63 = vld [vmem:[#allocation8 + $0x28] sm:$0xff] }
  0x67   :  { %773 = vmatprep.subr.bf16.mxu1 %v1003_v0  ;;  %v795_v61 = vpack.c.bf16 %v326_v60, %v325_v58  ;;  %v798_v2 = vpack.c.bf16 %v328_v63, %v327_v62  ;;  %v329_v3 = vld [vmem:[#allocation8 + $0x30] sm:$0xff]  ;;  %v330_v4 = vld [vmem:[#allocation8 + $0x38] sm:$0xff]  ;;  %v331_v6 = vld [vmem:[#allocation8 + $0x40] sm:$0xff] }
  0x68   :  { %v801_v5 = vpack.c.bf16 %v330_v4, %v329_v3  ;;  %v332_v7 = vld [vmem:[#allocation8 + $0x48] sm:$0xff]  ;;  %v333_v9 = vld [vmem:[#allocation8 + $0x50] sm:$0xff]  ;;  %v334_v10 = vld [vmem:[#allocation8 + $0x58] sm:$0xff] }
  0x69   :  { %754 = vmatpush3.bf16.msra.mxu0 %v753_v13  ;;  %v804_v8 = vpack.c.bf16 %v332_v7, %v331_v6  ;;  %v807_v11 = vpack.c.bf16 %v334_v10, %v333_v9  ;;  %v335_v12 = vld [vmem:[#allocation8 + $0x60] sm:$0xff]  ;;  %v336_v13 = vld [vmem:[#allocation8 + $0x68] sm:$0xff]  ;;  %v530_v24 = vld [vmem:[%s1218_s3] ss:$0 sm:$0xff] }
  0x6a   :  { %755 = vmatprep.subr.bf16.mxu0 %v1003_v0  ;;  %775 = vmatpush3.bf16.msra.mxu1 %v774_v40  ;;  %v810_v14 = vpack.c.bf16 %v336_v13, %v335_v12  ;;  %v417_v33 = vld [vmem:[#allocation10] sm:$0xff]  ;;  %v418_v34 = vld [vmem:[#allocation10 + $0x8] sm:$0xff]  ;;  %v419_v35 = vld [vmem:[#allocation10 + $0x10] sm:$0xff] }
  0x6b   :  { %776 = vmatprep.subr.bf16.mxu1 %v1003_v0  ;;  %v816_v36 = vpack.c.bf16 %v418_v34, %v417_v33  ;;  %v420_v37 = vld [vmem:[#allocation10 + $0x18] sm:$0xff]  ;;  %v421_v39 = vld [vmem:[#allocation10 + $0x20] sm:$0xff]  ;;  %v422_v40 = vld [vmem:[#allocation10 + $0x28] sm:$0xff] }
  0x6c   :  { %v819_v38 = vpack.c.bf16 %v420_v37, %v419_v35  ;;  %v822_v41 = vpack.c.bf16 %v422_v40, %v421_v39  ;;  %v424_v42 = vld [vmem:[#allocation10 + $0x38] sm:$0xff]  ;;  %v425_v44 = vld [vmem:[#allocation10 + $0x40] sm:$0xff]  ;;  %v426_v45 = vld [vmem:[#allocation10 + $0x48] sm:$0xff] }
  0x6d   :  { %757 = vmatpush3.bf16.msra.mxu0 %v756_v16  ;;  %v427_v47 = vld [vmem:[#allocation10 + $0x50] sm:$0xff]  ;;  %v428_v48 = vld [vmem:[#allocation10 + $0x58] sm:$0xff]  ;;  %v429_v50 = vld [vmem:[#allocation10 + $0x60] sm:$0xff] }
  0x6e   :  { %758 = vmatprep.subr.bf16.mxu0 %v1003_v0  ;;  %778 = vmatpush3.bf16.msra.mxu1 %v777_v43  ;;  %v430_v51 = vld [vmem:[#allocation10 + $0x68] sm:$0xff]  ;;  %v532_v53 = vld [vmem:[%s1221_s6] ss:$0 sm:$0xff]  ;;  %v431_v58 = vld [vmem:[#allocation10 + $0x70] sm:$0xff] }
  0x6f   :  { %779 = vmatprep.subr.bf16.mxu1 %v1003_v0  ;;  %v534_v3 = vld [vmem:[%s1225_s10] ss:$0 sm:$0xff] }
  0x71   :  { %760 = vmatpush3.bf16.msra.mxu0 %v759_v19 }
  0x72   :  { %761 = vmatprep.subr.bf16.mxu0 %v1003_v0  ;;  %781 = vmatpush3.bf16.msra.mxu1 %v780_v46  ;;  %v828_v46 = vpack.c.bf16 %v426_v45, %v425_v44 }
  0x73   :  { %782 = vmatprep.subr.bf16.mxu1 %v1003_v0 }
  0x75   :  { %763 = vmatpush3.bf16.msra.mxu0 %v762_v22 }
  0x76   :  { %764 = vmatprep.subr.bf16.mxu0 %v1003_v0  ;;  %784 = vmatpush3.bf16.msra.mxu1 %v783_v49  ;;  %v831_v49 = vpack.c.bf16 %v428_v48, %v427_v47 }
  0x77   :  { %785 = vmatprep.subr.bf16.mxu1 %v1003_v0 }
  0x79   :  { %766 = vmatpush3.bf16.msra.mxu0 %v765_v25 }
  0x7a   :  { %791 = vmatprep.subr.bf16.mxu0 %v1003_v0  ;;  %787 = vmatpush3.bf16.msra.mxu1 %v786_v52  ;;  %v834_v52 = vpack.c.bf16 %v430_v51, %v429_v50 }
  0x7b   :  { %788 = vmatprep.subr.bf16.mxu1 %v1003_v0 }
  0x7c   :  { %636 = vmatmul.mubr.f32.vlgmr.msra.gmra.mrb[0].mxu0 %v105_v26  ;;  %v531_v26 = vld [vmem:[%s1219_s4] ss:$0 sm:$0xff] }
  0x7d   :  { %705 = vmatprep.mubr.msk.f32.mxu0 %vm1004_vm0, %v1005_v1  ;;  %793 = vmatpush3.bf16.msra.mxu0 %v792_v59  ;;  %v432_v59 = vld [vmem:[#allocation10 + $0x78] sm:$0xff] }
  0x7e   :  { %790 = vmatpush3.bf16.msra.mxu1 %v789_v55  ;;  %794 = vmatprep.subr.bf16.mxu0 %v1003_v0  ;;  %v837_v60 = vpack.c.bf16 %v432_v59, %v431_v58 }
  0x7f   :  { %815 = vmatprep.subr.bf16.mxu1 %v1003_v0 }
  0x81   :  { %796 = vmatpush3.bf16.msra.mxu0 %v795_v61  ;;  %v533_v61 = vld [vmem:[%s1223_s8] ss:$0 sm:$0xff] }
  0x82   :  { %797 = vmatprep.subr.bf16.mxu0 %v1003_v0 }
  0x85   :  { %799 = vmatpush3.bf16.msra.mxu0 %v798_v2 }
  0x86   :  { %800 = vmatprep.subr.bf16.mxu0 %v1003_v0 }
  0x89   :  { %802 = vmatpush3.bf16.msra.mxu0 %v801_v5 }
  0x8a   :  { %803 = vmatprep.subr.bf16.mxu0 %v1003_v0 }
  0x8d   :  { %805 = vmatpush3.bf16.msra.mxu0 %v804_v8 }
  0x8e   :  { %806 = vmatprep.subr.bf16.mxu0 %v1003_v0 }
  0x91   :  { %808 = vmatpush3.bf16.msra.mxu0 %v807_v11 }
  0x92   :  { %809 = vmatprep.subr.bf16.mxu0 %v1003_v0 }
  0x95   :  { %811 = vmatpush3.bf16.msra.mxu0 %v810_v14 }
  0x96   :  { %812 = vmatprep.subr.bf16.mxu0 %v1003_v0 }
 0x14f   :  { %v195_v28 = vpop.f32.mrb[0].mxu0 }
 0x150   :  { %v1158_v29 = vadd.f32 %v529_v27, %v195_v28  ;;  %v637_v30 = vpop.f32.mrb[1].mxu0 }
 0x152   :  { %199 = vadd.xlane.f32.xlu0 %v1158_v29  ;;  %v202_v31 = vmul.f32 %v1158_v29, %v1158_v29 }
 0x156   :  { %203 = vadd.xlane.f32.xlu0 %v202_v31  ;;  %v337_v31 = vld [vmem:[#allocation8 + $0x70] sm:$0xff] }
 0x1df   :  { %v200_v15 = vpop.xlane.xlu0 %199 }
 0x1e0   :  { %v201_v16 = vmul.f32 0.03125, %v200_v15 }
 0x1e2   :  { %v206_v18 = vmul.f32 %v201_v16, %v201_v16  ;;  %v208_v22 = vsub.f32 %v1158_v29, %v201_v16  ;;  %v338_v29 = vld [vmem:[#allocation8 + $0x78] sm:$0xff] }
 0x1e3   :  { %v204_v17 = vpop.xlane.xlu0 %203  ;;  %v813_v32 = vpack.c.bf16 %v338_v29, %v337_v31 }
 0x1e4   :  { %v205_v19 = vmul.f32 0.03125, %v204_v17 }
 0x1e5   :  { %814 = vmatpush3.bf16.msra.mxu0 %v813_v32 }
 0x1e6   :  { %v207_v20 = vsub.f32 %v205_v19, %v206_v18 }
 0x1e8   :  { %v209_v21 = vadd.f32 1e-05, %v207_v20 }
 0x1ea   :  { %850 = vrsqrt.f32 %v209_v21 }
 0x1f4   :  { %v851_v23 = vpop.eup %850 }
 0x1f5   :  { %v211_v25 = vmul.f32 %v851_v23, %v208_v22 }
 0x1f7   :  { %v219_v27 = vmul.f32 %v530_v24, %v211_v25 }
 0x1f9   :  { %v227_v28 = vadd.f32 %v531_v26, %v219_v27 }
 0x1fb   :  { %852 = vtanh.f32 %v227_v28 }
 0x205   :  { %v853_v30 = vpop.eup %852 }
 0x206   :  { %671 = vmatmul.mubr.f32.vlgmr.msra.gmra.mrb[0].mxu1 %v853_v30 }
 0x207   :  { %740 = vmatprep.mubr.msk.f32.mxu1 %vm1004_vm0, %v1005_v1  ;;  %817 = vmatpush3.bf16.msra.mxu1 %v816_v36  ;;  %v423_v1 = vld [vmem:[#allocation10 + $0x30] sm:$0xff] }
 0x208   :  { %818 = vmatprep.subr.bf16.mxu1 %v1003_v0  ;;  %v825_v43 = vpack.c.bf16 %v424_v42, %v423_v1 }
 0x20b   :  { %820 = vmatpush3.bf16.msra.mxu1 %v819_v38 }
 0x20c   :  { %821 = vmatprep.subr.bf16.mxu1 %v1003_v0 }
 0x20f   :  { %823 = vmatpush3.bf16.msra.mxu1 %v822_v41 }
 0x210   :  { %824 = vmatprep.subr.bf16.mxu1 %v1003_v0 }
 0x213   :  { %826 = vmatpush3.bf16.msra.mxu1 %v825_v43 }
 0x214   :  { %827 = vmatprep.subr.bf16.mxu1 %v1003_v0 }
 0x217   :  { %829 = vmatpush3.bf16.msra.mxu1 %v828_v46 }
 0x218   :  { %830 = vmatprep.subr.bf16.mxu1 %v1003_v0 }
 0x21b   :  { %832 = vmatpush3.bf16.msra.mxu1 %v831_v49 }
 0x21c   :  { %833 = vmatprep.subr.bf16.mxu1 %v1003_v0 }
 0x21f   :  { %835 = vmatpush3.bf16.msra.mxu1 %v834_v52 }
 0x220   :  { %836 = vmatprep.subr.bf16.mxu1 %v1003_v0 }
 0x223   :  { %838 = vmatpush3.bf16.msra.mxu1 %v837_v60 }
 0x2d9   :  { %v318_v54 = vpop.f32.mrb[0].mxu1 }
 0x2da   :  { %v319_v55 = vadd.f32 %v532_v53, %v318_v54  ;;  %v672_v56 = vpop.f32.mrb[1].mxu1 }
 0x2dc   :  { %v322_v57 = vmax.f32 %v319_v55, 0.0 }
 0x2de   :  { %706 = vmatmul.mubr.f32.vlgmr.msra.gmra.mrb[2].mxu0 %v322_v57 }
 0x3b1   :  { %v412_v62 = vpop.f32.mrb[2].mxu0 }
 0x3b2   :  { %v413_v63 = vadd.f32 %v533_v61, %v412_v62  ;;  %v707_v0 = vpop.f32.mrb[3].mxu0 }
 0x3b4   :  { %v416_v2 = vmax.f32 %v413_v63, 0.0 }
 0x3b6   :  { %741 = vmatmul.mubr.f32.vlgmr.msra.gmra.mrb[2].mxu1 %v416_v2 }
 0x489   :  { %v506_v4 = vpop.f32.mrb[2].mxu1 }
 0x48a   :  { %v507_v5 = vadd.f32 %v534_v3, %v506_v4  ;;  %v742_v6 = vpop.f32.mrb[3].mxu1 }
 0x48c   :  { %854 = vtanh.f32 %v507_v5 }
 0x496   :  { %v855_v7 = vpop.eup %854 }
 0x497   :  { %511 = vst [vmem:[#allocation11] sm:$0xff] %v855_v7 }
 0x498   :  { %977 = shalt.err (!%p974_p2)
}
 0x499   :  { %s978_s10 = scalar_lea.hbm %s1226_s11, 128 }
 0x49a   :  { %p979_p3 = scmp.ne.s32.totalorder %s1226_s11, %s978_s10  ;;  %p982_p4 = scmp.lt.u32.totalorder %s978_s10, %s1226_s11 }
 0x49c   :  { %p984_p5 = pnand %p982_p4, %p979_p3 }
 0x49e   :  { %987 = shalt.err (!%p984_p5)
}
 0x49f   :  { %521 = dma.vmem_to_hbm [thread:$0]  %s519_s26, 128, %s1226_s11, [#allocation4]  }
 0x4a0   :  { %994 = dma.done.wait [#allocation4], 128  }
 0x4a1   :  { %995 = vsyncadd [#allocation4], 4294967168 }
 0x4a2   :  { %525 = vsyncpa [#allocation3], 1 }
 0x4a3   :  { %526 = vsyncpa [#allocation6], 1 }
 0x4a4   :  { %527 = vsyncpa [#allocation9], 1 }
 0x4a5   :  { %528 = vsyncpa [#allocation4], 1 }

</bundles_post_ra>
